<compile_context>
chip_gen: v7x
topology: tpu7x:2x2x1
jax: 0.10.0
libtpu: 0.0.40
codegen_flags: <defaults>
</compile_context>

<pallas_src>
import jax
import jax.numpy as jnp
from jax import lax
from jax.experimental import pallas as pl
from jax.experimental.pallas import tpu as pltpu


def _make_conv_kernel(N, C_in, C_out, H, W, KH, KW, H_out, W_out, stride, padding):
    """Fully fused Conv2d kernel (NCHW in, NCHW out, zero padding)."""

    def kernel(x_ref, w_ref, b_ref, o_ref):
        # x_ref: (N, C_in, H, W)              VMEM
        # w_ref: (C_out*C_in*KH*KW,)          SMEM (flat OIHW weights)
        # b_ref: (C_out,)                     SMEM
        # o_ref: (N, C_out, H_out, W_out)     VMEM
        f32 = jnp.float32

        # Column tap-selection matrices: C_kw[c, ow] = 1 iff c == ow*stride + kw - padding.
        c_idx = lax.broadcasted_iota(jnp.int32, (W, W_out), 0)
        ow_idx = lax.broadcasted_iota(jnp.int32, (W, W_out), 1)
        col_sel = [
            jnp.where(c_idx == ow_idx * stride + (kw - padding), 1.0, 0.0)
            for kw in range(KW)
        ]
        # Row tap-selection matrices: R_kh[oh, r] = 1 iff r == oh*stride + kh - padding.
        oh_idx = lax.broadcasted_iota(jnp.int32, (H_out, H), 0)
        r_idx = lax.broadcasted_iota(jnp.int32, (H_out, H), 1)
        row_sel = [
            jnp.where(r_idx == oh_idx * stride + (kh - padding), 1.0, 0.0)
            for kh in range(KH)
        ]

        for n in range(N):
            # Column-gathered input per (ci, kw): x[n, ci] @ C_kw -> (H, W_out).
            # Zero padding is implicit: out-of-range taps select nothing (all-zero
            # columns/rows in the 0/1 matrices), contributing exactly 0.
            xc = [
                [
                    jnp.dot(x_ref[n, ci, :, :], col_sel[kw],
                            preferred_element_type=f32)
                    for kw in range(KW)
                ]
                for ci in range(C_in)
            ]
            for co in range(C_out):
                acc = jnp.zeros((H_out, W_out), f32)
                for kh in range(KH):
                    # VPU scalar-broadcast FMAs over the (C_in, KW) taps.
                    z = jnp.zeros((H, W_out), f32)
                    for ci in range(C_in):
                        for kw in range(KW):
                            w_s = w_ref[((co * C_in + ci) * KH + kh) * KW + kw]
                            z = z + w_s * xc[ci][kw]
                    # Row gather for this kh tap.
                    acc = acc + jnp.dot(row_sel[kh], z, preferred_element_type=f32)
                o_ref[n, co, :, :] = acc + b_ref[co]

    return kernel


def conv2d_pallas(x, w, b, *, stride, padding):
    """Conv2d (NCHW input, OIHW weight, square stride/padding), one fused
    Pallas kernel: no XLA-side im2col, NCHW output written directly."""
    N, C_in, H, W = x.shape
    C_out, C_in_w, KH, KW = w.shape
    assert C_in_w == C_in
    H_out = (H + 2 * padding - KH) // stride + 1
    W_out = (W + 2 * padding - KW) // stride + 1

    kernel = _make_conv_kernel(N, C_in, C_out, H, W, KH, KW, H_out, W_out,
                               stride, padding)
    return pl.pallas_call(
        kernel,
        out_shape=jax.ShapeDtypeStruct((N, C_out, H_out, W_out), jnp.float32),
        in_specs=[
            pl.BlockSpec(memory_space=pltpu.MemorySpace.VMEM),   # x, whole array
            pl.BlockSpec(memory_space=pltpu.MemorySpace.SMEM),   # flat weights
            pl.BlockSpec(memory_space=pltpu.MemorySpace.SMEM),   # bias
        ],
        out_specs=pl.BlockSpec(memory_space=pltpu.MemorySpace.VMEM),
    )(x, w.reshape(-1), b)


@jax.jit
def model_forward(x1, other, params):
    wA, bA, wB, bB = params
    v1 = conv2d_pallas(x1, wA, bA, stride=2, padding=2)   # (1, 2, 10, 10)
    # TODO(synk): convB / v2 = convB(v1), v3 = v2 * other, v4 = v3 * other are
    # dead code (the module returns v1; v2*other would not even broadcast in
    # PyTorch: (1,2,5,5) vs (1,2,4,4)), so they are elided from the hot path.
    del other, wB, bB
    return v1


def _conv_reference(x, w, b, stride, padding):
    out = lax.conv_general_dilated(
        x, w, window_strides=(stride, stride),
        padding=((padding, padding), (padding, padding)),
        dimension_numbers=("NCHW", "OIHW", "NCHW"),
    )
    return out + b.reshape(1, -1, 1, 1)


if __name__ == "__main__":
    key = jax.random.PRNGKey(0)
    k1, k2, k3, k4, k5, k6 = jax.random.split(key, 6)

    # deterministic parameter init (shapes from nn.Conv2d(2,2,2) / nn.Conv2d(2,2,3))
    wA = jax.random.normal(k1, (2, 2, 2, 2), dtype=jnp.float32) * 0.2
    bA = jax.random.normal(k2, (2,), dtype=jnp.float32) * 0.1
    wB = jax.random.normal(k3, (2, 2, 3, 3), dtype=jnp.float32) * 0.2
    bB = jax.random.normal(k4, (2,), dtype=jnp.float32) * 0.1
    params = (wA, bA, wB, bB)

    # inputs consistent with the module
    x1 = jax.random.normal(k5, (1, 2, 16, 16), dtype=jnp.float32)
    other = jax.random.normal(k6, (1, 2, 4, 4), dtype=jnp.float32)

    v1 = model_forward(x1, other, params)
    v1 = jax.block_until_ready(v1)

    # sanity check against XLA conv reference
    v1_ref = _conv_reference(x1, wA, bA, stride=2, padding=2)
    assert v1.shape == (1, 2, 10, 10)
    assert jnp.allclose(v1, v1_ref, atol=1e-4, rtol=1e-4)

    print("KERNEL_OK")
</pallas_src>

<mosaic_0001>
module attributes {stable_mosaic.version = 11 : i64} {
  func.func @kernel(%arg0: memref<1x2x16x16xf32, #tpu.memory_space<vmem>>, %arg1: memref<16xf32, #tpu.memory_space<smem>>, %arg2: memref<2xf32, #tpu.memory_space<smem>>, %arg3: memref<1x2x10x10xf32, #tpu.memory_space<vmem>>) attributes {dimension_semantics = [], scalar_prefetch = 0 : i64, scratch_operands = 0 : i64, tpu.core_type = #tpu.core_type<tc>} {
    %0 = tpu.iota {dimensions = array<i32: 0>} : vector<16x10xi32>
    %1 = tpu.iota {dimensions = array<i32: 1>} : vector<16x10xi32>
    %c2_i32 = arith.constant 2 : i32
    %2 = vector.broadcast %c2_i32 : i32 to vector<16x10xi32>
    %3 = arith.muli %1, %2 : vector<16x10xi32>
    %c-2_i32 = arith.constant -2 : i32
    %4 = vector.broadcast %c-2_i32 : i32 to vector<16x10xi32>
    %5 = arith.addi %3, %4 : vector<16x10xi32>
    %6 = arith.cmpi eq, %0, %5 : vector<16x10xi32>
    %cst = arith.constant 1.000000e+00 : f32
    %cst_0 = arith.constant 0.000000e+00 : f32
    %7 = vector.broadcast %cst : f32 to vector<16x10xf32>
    %8 = vector.broadcast %cst_0 : f32 to vector<16x10xf32>
    %9 = arith.select %6, %7, %8 : vector<16x10xi1>, vector<16x10xf32>
    %c2_i32_1 = arith.constant 2 : i32
    %10 = vector.broadcast %c2_i32_1 : i32 to vector<16x10xi32>
    %11 = arith.muli %1, %10 : vector<16x10xi32>
    %c-1_i32 = arith.constant -1 : i32
    %12 = vector.broadcast %c-1_i32 : i32 to vector<16x10xi32>
    %13 = arith.addi %11, %12 : vector<16x10xi32>
    %14 = arith.cmpi eq, %0, %13 : vector<16x10xi32>
    %cst_2 = arith.constant 1.000000e+00 : f32
    %cst_3 = arith.constant 0.000000e+00 : f32
    %15 = vector.broadcast %cst_2 : f32 to vector<16x10xf32>
    %16 = vector.broadcast %cst_3 : f32 to vector<16x10xf32>
    %17 = arith.select %14, %15, %16 : vector<16x10xi1>, vector<16x10xf32>
    %18 = tpu.iota {dimensions = array<i32: 0>} : vector<10x16xi32>
    %19 = tpu.iota {dimensions = array<i32: 1>} : vector<10x16xi32>
    %c2_i32_4 = arith.constant 2 : i32
    %20 = vector.broadcast %c2_i32_4 : i32 to vector<10x16xi32>
    %21 = arith.muli %18, %20 : vector<10x16xi32>
    %c-2_i32_5 = arith.constant -2 : i32
    %22 = vector.broadcast %c-2_i32_5 : i32 to vector<10x16xi32>
    %23 = arith.addi %21, %22 : vector<10x16xi32>
    %24 = arith.cmpi eq, %19, %23 : vector<10x16xi32>
    %cst_6 = arith.constant 1.000000e+00 : f32
    %cst_7 = arith.constant 0.000000e+00 : f32
    %25 = vector.broadcast %cst_6 : f32 to vector<10x16xf32>
    %26 = vector.broadcast %cst_7 : f32 to vector<10x16xf32>
    %27 = arith.select %24, %25, %26 : vector<10x16xi1>, vector<10x16xf32>
    %c2_i32_8 = arith.constant 2 : i32
    %28 = vector.broadcast %c2_i32_8 : i32 to vector<10x16xi32>
    %29 = arith.muli %18, %28 : vector<10x16xi32>
    %c-1_i32_9 = arith.constant -1 : i32
    %30 = vector.broadcast %c-1_i32_9 : i32 to vector<10x16xi32>
    %31 = arith.addi %29, %30 : vector<10x16xi32>
    %32 = arith.cmpi eq, %19, %31 : vector<10x16xi32>
    %cst_10 = arith.constant 1.000000e+00 : f32
    %cst_11 = arith.constant 0.000000e+00 : f32
    %33 = vector.broadcast %cst_10 : f32 to vector<10x16xf32>
    %34 = vector.broadcast %cst_11 : f32 to vector<10x16xf32>
    %35 = arith.select %32, %33, %34 : vector<10x16xi1>, vector<10x16xf32>
    %c0 = arith.constant 0 : index
    %c0_12 = arith.constant 0 : index
    %c0_13 = arith.constant 0 : index
    %c0_14 = arith.constant 0 : index
    %36 = vector.load %arg0[%c0, %c0_12, %c0_13, %c0_14] : memref<1x2x16x16xf32, #tpu.memory_space<vmem>>, vector<1x1x16x16xf32>
    %37 = vector.shape_cast %36 : vector<1x1x16x16xf32> to vector<16x16xf32>
    %cst_15 = arith.constant dense<0.000000e+00> : vector<16x10xf32>
    %38 = tpu.matmul %37, %9, %cst_15 {dimension_numbers = #tpu.dot_dimension_numbers<[1], [0], [0], [1], [0, 0, 1, 1], [], []>} : vector<16x16xf32>, vector<16x10xf32>, vector<16x10xf32> -> vector<16x10xf32>
    %c0_16 = arith.constant 0 : index
    %c0_17 = arith.constant 0 : index
    %c0_18 = arith.constant 0 : index
    %c0_19 = arith.constant 0 : index
    %39 = vector.load %arg0[%c0_16, %c0_17, %c0_18, %c0_19] : memref<1x2x16x16xf32, #tpu.memory_space<vmem>>, vector<1x1x16x16xf32>
    %40 = vector.shape_cast %39 : vector<1x1x16x16xf32> to vector<16x16xf32>
    %cst_20 = arith.constant dense<0.000000e+00> : vector<16x10xf32>
    %41 = tpu.matmul %40, %17, %cst_20 {dimension_numbers = #tpu.dot_dimension_numbers<[1], [0], [0], [1], [0, 0, 1, 1], [], []>} : vector<16x16xf32>, vector<16x10xf32>, vector<16x10xf32> -> vector<16x10xf32>
    %c0_21 = arith.constant 0 : index
    %c1 = arith.constant 1 : index
    %c0_22 = arith.constant 0 : index
    %c0_23 = arith.constant 0 : index
    %42 = vector.load %arg0[%c0_21, %c1, %c0_22, %c0_23] : memref<1x2x16x16xf32, #tpu.memory_space<vmem>>, vector<1x1x16x16xf32>
    %43 = vector.shape_cast %42 : vector<1x1x16x16xf32> to vector<16x16xf32>
    %cst_24 = arith.constant dense<0.000000e+00> : vector<16x10xf32>
    %44 = tpu.matmul %43, %9, %cst_24 {dimension_numbers = #tpu.dot_dimension_numbers<[1], [0], [0], [1], [0, 0, 1, 1], [], []>} : vector<16x16xf32>, vector<16x10xf32>, vector<16x10xf32> -> vector<16x10xf32>
    %c0_25 = arith.constant 0 : index
    %c1_26 = arith.constant 1 : index
    %c0_27 = arith.constant 0 : index
    %c0_28 = arith.constant 0 : index
    %45 = vector.load %arg0[%c0_25, %c1_26, %c0_27, %c0_28] : memref<1x2x16x16xf32, #tpu.memory_space<vmem>>, vector<1x1x16x16xf32>
    %46 = vector.shape_cast %45 : vector<1x1x16x16xf32> to vector<16x16xf32>
    %cst_29 = arith.constant dense<0.000000e+00> : vector<16x10xf32>
    %47 = tpu.matmul %46, %17, %cst_29 {dimension_numbers = #tpu.dot_dimension_numbers<[1], [0], [0], [1], [0, 0, 1, 1], [], []>} : vector<16x16xf32>, vector<16x10xf32>, vector<16x10xf32> -> vector<16x10xf32>
    %cst_30 = arith.constant 0.000000e+00 : f32
    %48 = vector.broadcast %cst_30 : f32 to vector<10x10xf32>
    %cst_31 = arith.constant 0.000000e+00 : f32
    %49 = vector.broadcast %cst_31 : f32 to vector<16x10xf32>
    %c0_32 = arith.constant 0 : index
    %50 = memref.load %arg1[%c0_32] : memref<16xf32, #tpu.memory_space<smem>>
    %51 = vector.broadcast %50 : f32 to vector<16x10xf32>
    %52 = arith.mulf %51, %38 : vector<16x10xf32>
    %53 = arith.addf %49, %52 : vector<16x10xf32>
    %c1_33 = arith.constant 1 : index
    %54 = memref.load %arg1[%c1_33] : memref<16xf32, #tpu.memory_space<smem>>
    %55 = vector.broadcast %54 : f32 to vector<16x10xf32>
    %56 = arith.mulf %55, %41 : vector<16x10xf32>
    %57 = arith.addf %53, %56 : vector<16x10xf32>
    %c4 = arith.constant 4 : index
    %58 = memref.load %arg1[%c4] : memref<16xf32, #tpu.memory_space<smem>>
    %59 = vector.broadcast %58 : f32 to vector<16x10xf32>
    %60 = arith.mulf %59, %44 : vector<16x10xf32>
    %61 = arith.addf %57, %60 : vector<16x10xf32>
    %c5 = arith.constant 5 : index
    %62 = memref.load %arg1[%c5] : memref<16xf32, #tpu.memory_space<smem>>
    %63 = vector.broadcast %62 : f32 to vector<16x10xf32>
    %64 = arith.mulf %63, %47 : vector<16x10xf32>
    %65 = arith.addf %61, %64 : vector<16x10xf32>
    %cst_34 = arith.constant dense<0.000000e+00> : vector<10x10xf32>
    %66 = tpu.matmul %27, %65, %cst_34 {dimension_numbers = #tpu.dot_dimension_numbers<[1], [0], [0], [1], [0, 0, 1, 1], [], []>} : vector<10x16xf32>, vector<16x10xf32>, vector<10x10xf32> -> vector<10x10xf32>
    %67 = arith.addf %48, %66 : vector<10x10xf32>
    %cst_35 = arith.constant 0.000000e+00 : f32
    %68 = vector.broadcast %cst_35 : f32 to vector<16x10xf32>
    %c2 = arith.constant 2 : index
    %69 = memref.load %arg1[%c2] : memref<16xf32, #tpu.memory_space<smem>>
    %70 = vector.broadcast %69 : f32 to vector<16x10xf32>
    %71 = arith.mulf %70, %38 : vector<16x10xf32>
    %72 = arith.addf %68, %71 : vector<16x10xf32>
    %c3 = arith.constant 3 : index
    %73 = memref.load %arg1[%c3] : memref<16xf32, #tpu.memory_space<smem>>
    %74 = vector.broadcast %73 : f32 to vector<16x10xf32>
    %75 = arith.mulf %74, %41 : vector<16x10xf32>
    %76 = arith.addf %72, %75 : vector<16x10xf32>
    %c6 = arith.constant 6 : index
    %77 = memref.load %arg1[%c6] : memref<16xf32, #tpu.memory_space<smem>>
    %78 = vector.broadcast %77 : f32 to vector<16x10xf32>
    %79 = arith.mulf %78, %44 : vector<16x10xf32>
    %80 = arith.addf %76, %79 : vector<16x10xf32>
    %c7 = arith.constant 7 : index
    %81 = memref.load %arg1[%c7] : memref<16xf32, #tpu.memory_space<smem>>
    %82 = vector.broadcast %81 : f32 to vector<16x10xf32>
    %83 = arith.mulf %82, %47 : vector<16x10xf32>
    %84 = arith.addf %80, %83 : vector<16x10xf32>
    %cst_36 = arith.constant dense<0.000000e+00> : vector<10x10xf32>
    %85 = tpu.matmul %35, %84, %cst_36 {dimension_numbers = #tpu.dot_dimension_numbers<[1], [0], [0], [1], [0, 0, 1, 1], [], []>} : vector<10x16xf32>, vector<16x10xf32>, vector<10x10xf32> -> vector<10x10xf32>
    %86 = arith.addf %67, %85 : vector<10x10xf32>
    %c0_37 = arith.constant 0 : index
    %87 = memref.load %arg2[%c0_37] : memref<2xf32, #tpu.memory_space<smem>>
    %88 = vector.broadcast %87 : f32 to vector<10x10xf32>
    %89 = arith.addf %86, %88 : vector<10x10xf32>
    %c0_38 = arith.constant 0 : index
    %c0_39 = arith.constant 0 : index
    %c0_40 = arith.constant 0 : index
    %c0_41 = arith.constant 0 : index
    %90 = vector.load %arg3[%c0_38, %c0_39, %c0_40, %c0_41] : memref<1x2x10x10xf32, #tpu.memory_space<vmem>>, vector<1x1x10x10xf32>
    %91 = vector.shape_cast %90 : vector<1x1x10x10xf32> to vector<10x10xf32>
    %92 = vector.shape_cast %89 : vector<10x10xf32> to vector<1x1x10x10xf32>
    tpu.vector_store %arg3[%c0_38, %c0_39, %c0_40, %c0_41], %92 {strides = array<i32>} : memref<1x2x10x10xf32, #tpu.memory_space<vmem>>, vector<1x1x10x10xf32>,
    %cst_42 = arith.constant 0.000000e+00 : f32
    %93 = vector.broadcast %cst_42 : f32 to vector<10x10xf32>
    %cst_43 = arith.constant 0.000000e+00 : f32
    %94 = vector.broadcast %cst_43 : f32 to vector<16x10xf32>
    %c8 = arith.constant 8 : index
    %95 = memref.load %arg1[%c8] : memref<16xf32, #tpu.memory_space<smem>>
    %96 = vector.broadcast %95 : f32 to vector<16x10xf32>
    %97 = arith.mulf %96, %38 : vector<16x10xf32>
    %98 = arith.addf %94, %97 : vector<16x10xf32>
    %c9 = arith.constant 9 : index
    %99 = memref.load %arg1[%c9] : memref<16xf32, #tpu.memory_space<smem>>
    %100 = vector.broadcast %99 : f32 to vector<16x10xf32>
    %101 = arith.mulf %100, %41 : vector<16x10xf32>
    %102 = arith.addf %98, %101 : vector<16x10xf32>
    %c12 = arith.constant 12 : index
    %103 = memref.load %arg1[%c12] : memref<16xf32, #tpu.memory_space<smem>>
    %104 = vector.broadcast %103 : f32 to vector<16x10xf32>
    %105 = arith.mulf %104, %44 : vector<16x10xf32>
    %106 = arith.addf %102, %105 : vector<16x10xf32>
    %c13 = arith.constant 13 : index
    %107 = memref.load %arg1[%c13] : memref<16xf32, #tpu.memory_space<smem>>
    %108 = vector.broadcast %107 : f32 to vector<16x10xf32>
    %109 = arith.mulf %108, %47 : vector<16x10xf32>
    %110 = arith.addf %106, %109 : vector<16x10xf32>
    %cst_44 = arith.constant dense<0.000000e+00> : vector<10x10xf32>
    %111 = tpu.matmul %27, %110, %cst_44 {dimension_numbers = #tpu.dot_dimension_numbers<[1], [0], [0], [1], [0, 0, 1, 1], [], []>} : vector<10x16xf32>, vector<16x10xf32>, vector<10x10xf32> -> vector<10x10xf32>
    %112 = arith.addf %93, %111 : vector<10x10xf32>
    %cst_45 = arith.constant 0.000000e+00 : f32
    %113 = vector.broadcast %cst_45 : f32 to vector<16x10xf32>
    %c10 = arith.constant 10 : index
    %114 = memref.load %arg1[%c10] : memref<16xf32, #tpu.memory_space<smem>>
    %115 = vector.broadcast %114 : f32 to vector<16x10xf32>
    %116 = arith.mulf %115, %38 : vector<16x10xf32>
    %117 = arith.addf %113, %116 : vector<16x10xf32>
    %c11 = arith.constant 11 : index
    %118 = memref.load %arg1[%c11] : memref<16xf32, #tpu.memory_space<smem>>
    %119 = vector.broadcast %118 : f32 to vector<16x10xf32>
    %120 = arith.mulf %119, %41 : vector<16x10xf32>
    %121 = arith.addf %117, %120 : vector<16x10xf32>
    %c14 = arith.constant 14 : index
    %122 = memref.load %arg1[%c14] : memref<16xf32, #tpu.memory_space<smem>>
    %123 = vector.broadcast %122 : f32 to vector<16x10xf32>
    %124 = arith.mulf %123, %44 : vector<16x10xf32>
    %125 = arith.addf %121, %124 : vector<16x10xf32>
    %c15 = arith.constant 15 : index
    %126 = memref.load %arg1[%c15] : memref<16xf32, #tpu.memory_space<smem>>
    %127 = vector.broadcast %126 : f32 to vector<16x10xf32>
    %128 = arith.mulf %127, %47 : vector<16x10xf32>
    %129 = arith.addf %125, %128 : vector<16x10xf32>
    %cst_46 = arith.constant dense<0.000000e+00> : vector<10x10xf32>
    %130 = tpu.matmul %35, %129, %cst_46 {dimension_numbers = #tpu.dot_dimension_numbers<[1], [0], [0], [1], [0, 0, 1, 1], [], []>} : vector<10x16xf32>, vector<16x10xf32>, vector<10x10xf32> -> vector<10x10xf32>
    %131 = arith.addf %112, %130 : vector<10x10xf32>
    %c1_47 = arith.constant 1 : index
    %132 = memref.load %arg2[%c1_47] : memref<2xf32, #tpu.memory_space<smem>>
    %133 = vector.broadcast %132 : f32 to vector<10x10xf32>
    %134 = arith.addf %131, %133 : vector<10x10xf32>
    %c0_48 = arith.constant 0 : index
    %c1_49 = arith.constant 1 : index
    %c0_50 = arith.constant 0 : index
    %c0_51 = arith.constant 0 : index
    %135 = vector.load %arg3[%c0_48, %c1_49, %c0_50, %c0_51] : memref<1x2x10x10xf32, #tpu.memory_space<vmem>>, vector<1x1x10x10xf32>
    %136 = vector.shape_cast %135 : vector<1x1x10x10xf32> to vector<10x10xf32>
    %137 = vector.shape_cast %134 : vector<10x10xf32> to vector<1x1x10x10xf32>
    tpu.vector_store %arg3[%c0_48, %c1_49, %c0_50, %c0_51], %137 {strides = array<i32>} : memref<1x2x10x10xf32, #tpu.memory_space<vmem>>, vector<1x1x10x10xf32>,
    return
  }
}

</mosaic_0001>

<bundles_post_ra>
// kernel: model_forward.1
= control target key start
LH: loop header
LB: loop body
LE: loop exit
PB: predicated region body
PF: predicated region fallthrough
CT: control target
= control target key end

     0   :  { %8 = vsyncpa [#allocation3], 0  ;;  %s1204_s0 = inlined_call_operand.hbm [shape: f32[1,2,16,16], index: 0, kind: input, shape index: {}]   ;;  %s1205_s1 = inlined_call_operand.vmem [shape: f32[16], index: 1, kind: input, shape index: {}]   ;;  %s1206_s2 = inlined_call_operand.vmem [shape: f32[2], index: 2, kind: input, shape index: {}]   ;;  %s1207_s3 = inlined_call_operand.vmem [shape: f32[1,2,10,10], index: 3, kind: output, shape index: {}]  }
   0x1   :  { %9 = vsyncpa [#allocation4], 0 }
   0x2   :  { %10 = vsyncpa [#allocation7], 0  ;;  %s1056_s12 = smov [#allocation2]   ;;  %s29_s16 = sshll.u32 %s1205_s1, 4  ;;  %s30_s16 = int_to_ptr.vmem [resolvable:$true] %s29_s16 }
   0x3   :  { %s16_s13 = sshll.u32 %s1056_s12, 4  ;;  %s1004_s19 = scalar_lea.hbm %s1204_s0, 512  ;;  %s17_s13 = int_to_ptr.vmem [resolvable:$true] %s16_s13 }
   0x4   :  { %p1005_p0 = scmp.ne.s32.totalorder %s1204_s0, %s1004_s19  ;;  %p1008_p1 = scmp.lt.u32.totalorder %s1004_s19, %s1204_s0 }
   0x6   :  { %p1010_p2 = pnand %p1008_p1, %p1005_p0 }
   0x8   :  { %1013 = shalt.err (!%p1010_p2)
}
   0x9   :  { %s1014_s24 = scalar_lea.vmem %s17_s13, 512  ;;  %p1019_p4 = scmp.lt.s32.totalorder %s17_s13, %s17_s13 }
   0xa   :  { %p1015_p3 = scmp.ne.s32.totalorder %s17_s13, %s1014_s24  ;;  %p1020_p5 = scmp.lt.s32.totalorder %s1014_s24, %s1014_s24 }
   0xc   :  { %p1021_p6 = por %p1020_p5, %p1019_p4 }
   0xe   :  { %p1022_p7 = pnand %p1021_p6, %p1015_p3 }
  0x10   :  { %1025 = shalt.err (!%p1022_p7)
}
  0x11   :  { %s1057_s1 = smov 128   ;;  %s1058_s25 = smov 8  }
  0x12   :  { %22 = dma.hbm_to_vmem [thread:$0]  %s1204_s0, 512, %s17_s13, [#allocation3], %s1057_s1, %s1057_s1, %s1058_s25  }
  0x13   :  { %s1026_s28 = scalar_lea.vmem %s30_s16, 16  ;;  %p1031_p9 = scmp.lt.s32.totalorder %s30_s16, %s30_s16 }
  0x14   :  { %p1027_p8 = scmp.ne.s32.totalorder %s30_s16, %s1026_s28  ;;  %p1032_p10 = scmp.lt.s32.totalorder %s1026_s28, %s1026_s28 }
  0x16   :  { %p1033_p11 = por %p1032_p10, %p1031_p9 }
  0x18   :  { %p1034_p12 = pnand %p1033_p11, %p1027_p8 }
  0x1a   :  { %1037 = shalt.err (!%p1034_p12)
}
  0x1b   :  { %s1059_s29 = smov [#allocation5]   ;;  %s39_s5 = sshll.u32 %s1206_s2, 4  ;;  %s40_s5 = int_to_ptr.vmem [resolvable:$true] %s39_s5 }
  0x1c   :  { %32 = dma.vmem_to_smem %s30_s16, 16, %s1059_s29, [#allocation4]  }
  0x1d   :  { %s1038_s6 = scalar_lea.vmem %s40_s5, 16  ;;  %p1043_p0 = scmp.lt.s32.totalorder %s40_s5, %s40_s5 }
  0x1e   :  { %p1039_p13 = scmp.ne.s32.totalorder %s40_s5, %s1038_s6  ;;  %p1044_p1 = scmp.lt.s32.totalorder %s1038_s6, %s1038_s6 }
  0x20   :  { %p1045_p2 = por %p1044_p1, %p1043_p0 }
  0x22   :  { %p1046_p3 = pnand %p1045_p2, %p1039_p13 }
  0x24   :  { %1049 = shalt.err (!%p1046_p3)
}
  0x25   :  { %s1060_s0 = smov [#allocation6]  }
  0x26   :  { %42 = dma.vmem_to_smem %s40_s5, 16, %s1060_s0, [#allocation7]  }
  0x27   :  { %1050 = dma.done.wait [#allocation3], 512  }
  0x28   :  { %1051 = vsyncadd [#allocation3], 4294966784 }
  0x29   :  { %1052 = dma.done.wait [#allocation4], 16  }
  0x2a   :  { %1053 = vsyncadd [#allocation4], 4294967280 }
  0x2b   :  { %1054 = dma.done.wait [#allocation7], 16  }
  0x2c   :  { %1055 = vsyncadd [#allocation7], 4294967280 }
  0x2d   :  { %52 = sfence }
  0x2e   :  { %v53_v0 = vlaneseq  ;;  %v83_v1 = vld [vmem:[#allocation2] sm:$0xff]  ;;  %vm85_vm0 = vcmask 130048   ;;  %v1061_v8 = vmov 1.0|1.0   ;;  %v84_v9 = vld [vmem:[#allocation2 + $0x8] sm:$0xff]  ;;  %v243_v10 = vld [vmem:[#allocation2 + $0x10] sm:$0xff] }
  0x2f   :  { %909 = vmatprep.mubr.msk.f32.mxu0 %vm85_vm0, %v83_v1  ;;  %916 = vmatprep.mubr.msk.f32.mxu1 %vm85_vm0, %v83_v1  ;;  %v244_v11 = vld [vmem:[#allocation2 + $0x18] sm:$0xff]  ;;  %v1062_v14 = vmov 0.0   ;;  %s1124_s2 = sld [smem:[#allocation5]]  ;;  %s1126_s7 = sld [smem:[#allocation5 + $0x2]]  ;;  %vm617_vm11 = vcmask 74752   ;;  %vm615_vm12 = vcmask 80896  }
  0x30   :  { %v54_v2 = vshrl.u32 %v53_v0, 7  ;;  %v1103_v3 = vand.u32 127, %v53_v0  ;;  %s1128_s8 = sld [smem:[#allocation5 + $0x8]]  ;;  %s1130_s9 = sld [smem:[#allocation5 + $0xa]] }
  0x31   :  { %s1132_s10 = sld [smem:[#allocation5 + $0x1]]  ;;  %s1134_s11 = sld [smem:[#allocation5 + $0x3]] }
  0x32   :  { %v1105_v4 = vadd.s32 8, %v54_v2  ;;  %v58_v5 = vmul.u32 2, %v1103_v3  ;;  %v69_v12 = vmul.u32 2, %v54_v2  ;;  %s1136_s12 = sld [smem:[#allocation5 + $0x9]]  ;;  %s1138_s13 = sld [smem:[#allocation5 + $0xb]] }
  0x33   :  { %s1140_s14 = sld [smem:[#allocation5 + $0x4]]  ;;  %s1142_s15 = sld [smem:[#allocation5 + $0x6]] }
  0x34   :  { %v59_v6 = vadd.s32 4294967294, %v58_v5  ;;  %v64_v7 = vadd.s32 4294967295, %v58_v5  ;;  %v77_v13 = vadd.s32 4294967295, %v69_v12  ;;  %v71_v16 = vadd.s32 4294967294, %v69_v12  ;;  %s1144_s16 = sld [smem:[#allocation5 + $0xc]]  ;;  %s1146_s17 = sld [smem:[#allocation5 + $0xe]] }
  0x35   :  { %s1148_s18 = sld [smem:[#allocation5 + $0x5]]  ;;  %s1150_s19 = sld [smem:[#allocation5 + $0x7]]  ;;  %v402_v18 = vstv %s1124_s2  ;;  %v70_v19 = vmul.u32 2, %v1105_v4  ;;  %v426_v20 = vstv %s1126_s7 }
  0x36   :  { %vm60_vm1 = vcmp.eq.s32.totalorder %v54_v2, %v59_v6  ;;  %vm61_vm2 = vcmp.eq.s32.totalorder %v1105_v4, %v59_v6  ;;  %vm65_vm3 = vcmp.eq.s32.totalorder %v54_v2, %v64_v7  ;;  %vm66_vm4 = vcmp.eq.s32.totalorder %v1105_v4, %v64_v7  ;;  %s1152_s20 = sld [smem:[#allocation5 + $0xd]]  ;;  %s1154_s21 = sld [smem:[#allocation5 + $0xf]] }
  0x37   :  { %vm961_vm5 = vmpackc.low %vm61_vm2, %vm60_vm1  ;;  %vm79_vm7 = vcmp.eq.s32.totalorder %v1103_v3, %v77_v13  ;;  %vm73_vm8 = vcmp.eq.s32.totalorder %v1103_v3, %v71_v16  ;;  %v620_v21 = vstv %s1128_s8  ;;  %v644_v22 = vstv %s1130_s9  ;;  %s611_s22 = sld [smem:[#allocation6]]  ;;  %s870_s23 = sld [smem:[#allocation6 + $0x1]] }
  0x38   :  { %962 = vmatprep.subr.msk.bf16.mxu0 %vm961_vm5, %v1061_v8  ;;  %vm965_vm6 = vmpackc.low %vm66_vm4, %vm65_vm3  ;;  %v81_v15 = vsel %vm79_vm7, 1.0, %v1062_v14  ;;  %v1122_v17 = vsel %vm73_vm8, 1.0, %v1062_v14  ;;  %v408_v23 = vstv %s1132_s10  ;;  %v432_v24 = vstv %s1134_s11 }
  0x39   :  { %966 = vmatprep.subr.msk.bf16.mxu1 %vm965_vm6, %v1061_v8  ;;  %964 = vmatpush3.bf16.msk.msra.mxu0 %vm961_vm5, %v1061_v8  ;;  %v626_v25 = vstv %s1136_s12  ;;  %v650_v26 = vstv %s1138_s13  ;;  %v414_v27 = vstv %s1140_s14  ;;  %v438_v28 = vstv %s1142_s15 }
  0x3a   :  { %968 = vmatpush3.bf16.msk.msra.mxu1 %vm965_vm6, %v1061_v8  ;;  %970 = vmatprep.subr.msk.bf16.mxu0 %vm961_vm5, %v1061_v8  ;;  %v632_v29 = vstv %s1144_s16  ;;  %v656_v30 = vstv %s1146_s17  ;;  %v1175_v36 = vadd.s32 4294967295, %v70_v19 }
  0x3b   :  { %974 = vmatprep.subr.msk.bf16.mxu1 %vm965_vm6, %v1061_v8  ;;  %v420_v31 = vstv %s1148_s18  ;;  %v444_v33 = vstv %s1150_s19 }
  0x3c   :  { %910 = vmatmul.mubr.msk.f32.vlgmr.msra.gmra.mrb[0].mxu0 %vm85_vm0, %v84_v9  ;;  %v638_v34 = vstv %s1152_s20  ;;  %v662_v35 = vstv %s1154_s21  ;;  %vm80_vm9 = vcmp.eq.s32.totalorder %v1103_v3, %v1175_v36 }
  0x3d   :  { %917 = vmatmul.mubr.msk.f32.vlgmr.msra.gmra.mrb[0].mxu1 %vm85_vm0, %v84_v9  ;;  %972 = vmatpush3.bf16.msk.msra.mxu0 %vm961_vm5, %v1061_v8  ;;  %v612_v4 = vstv %s611_s22 }
  0x3e   :  { %976 = vmatpush3.bf16.msk.msra.mxu1 %vm965_vm6, %v1061_v8  ;;  %923 = vmatprep.mubr.msk.f32.mxu0 %vm85_vm0, %v243_v10 }
  0x3f   :  { %930 = vmatprep.mubr.msk.f32.mxu1 %vm85_vm0, %v243_v10 }
  0x40   :  { %924 = vmatmul.mubr.msk.f32.vlgmr.msra.gmra.mrb[2].mxu0 %vm85_vm0, %v244_v11 }
  0x41   :  { %931 = vmatmul.mubr.msk.f32.vlgmr.msra.gmra.mrb[2].mxu1 %vm85_vm0, %v244_v11  ;;  %937 = vmatprep.mubr.msk.f32.mxu0 %vm85_vm0, %v81_v15 }
  0x42   :  { %951 = vmatprep.mubr.msk.f32.mxu1 %vm85_vm0, %v81_v15 }
 0x10f   :  { %v911_v32 = vpop.f32.mrb[0].mxu0 }
 0x110   :  { %v404_v37 = vmul.f32 %v911_v32, %v402_v18  ;;  %v428_v38 = vmul.f32 %v911_v32, %v426_v20  ;;  %v622_v39 = vmul.f32 %v911_v32, %v620_v21  ;;  %v646_v40 = vmul.f32 %v911_v32, %v644_v22  ;;  %v918_v41 = vpop.f32.mrb[0].mxu1  ;;  %v158_v42 = vpop.f32.mrb[1].mxu0 }
 0x111   :  { %v410_v43 = vmul.f32 %v918_v41, %v408_v23  ;;  %v434_v44 = vmul.f32 %v918_v41, %v432_v24  ;;  %v628_v45 = vmul.f32 %v918_v41, %v626_v25  ;;  %v652_v46 = vmul.f32 %v918_v41, %v650_v26  ;;  %v233_v47 = vpop.f32.mrb[1].mxu1 }
 0x112   :  { %v403_v48 = vmul.f32 %v402_v18, %v158_v42  ;;  %v427_v49 = vmul.f32 %v426_v20, %v158_v42  ;;  %v621_v50 = vmul.f32 %v620_v21, %v158_v42  ;;  %v645_v51 = vmul.f32 %v644_v22, %v158_v42 }
 0x113   :  { %v412_v52 = vadd.f32 %v410_v43, %v404_v37  ;;  %v436_v53 = vadd.f32 %v434_v44, %v428_v38  ;;  %v630_v54 = vadd.f32 %v628_v45, %v622_v39  ;;  %v654_v55 = vadd.f32 %v652_v46, %v646_v40  ;;  %v925_v56 = vpop.f32.mrb[2].mxu0 }
 0x114   :  { %v409_v57 = vmul.f32 %v408_v23, %v233_v47  ;;  %v433_v58 = vmul.f32 %v432_v24, %v233_v47  ;;  %v627_v59 = vmul.f32 %v626_v25, %v233_v47  ;;  %v651_v60 = vmul.f32 %v650_v26, %v233_v47  ;;  %v317_v61 = vpop.f32.mrb[3].mxu0  ;;  %v932_v62 = vpop.f32.mrb[2].mxu1 }
 0x115   :  { %v416_v63 = vmul.f32 %v925_v56, %v414_v27  ;;  %v440_v0 = vmul.f32 %v925_v56, %v438_v28  ;;  %v634_v1 = vmul.f32 %v925_v56, %v632_v29  ;;  %v658_v2 = vmul.f32 %v925_v56, %v656_v30  ;;  %v392_v5 = vpop.f32.mrb[3].mxu1 }
 0x116   :  { %v411_v6 = vadd.f32 %v409_v57, %v403_v48  ;;  %v435_v7 = vadd.f32 %v433_v58, %v427_v49  ;;  %v629_v8 = vadd.f32 %v627_v59, %v621_v50  ;;  %v653_v9 = vadd.f32 %v651_v60, %v645_v51 }
 0x117   :  { %v418_v10 = vadd.f32 %v416_v63, %v412_v52  ;;  %v442_v11 = vadd.f32 %v440_v0, %v436_v53  ;;  %v636_v12 = vadd.f32 %v634_v1, %v630_v54  ;;  %v660_v13 = vadd.f32 %v658_v2, %v654_v55 }
 0x118   :  { %v415_v15 = vmul.f32 %v414_v27, %v317_v61  ;;  %v439_v16 = vmul.f32 %v438_v28, %v317_v61  ;;  %v633_v18 = vmul.f32 %v632_v29, %v317_v61  ;;  %v657_v20 = vmul.f32 %v656_v30, %v317_v61 }
 0x119   :  { %v422_v21 = vmul.f32 %v932_v62, %v420_v31  ;;  %v446_v22 = vmul.f32 %v932_v62, %v444_v33  ;;  %v640_v23 = vmul.f32 %v932_v62, %v638_v34  ;;  %v664_v24 = vmul.f32 %v932_v62, %v662_v35 }
 0x11a   :  { %v417_v25 = vadd.f32 %v415_v15, %v411_v6  ;;  %v441_v26 = vadd.f32 %v439_v16, %v435_v7  ;;  %v635_v32 = vadd.f32 %v633_v18, %v629_v8  ;;  %v659_v37 = vadd.f32 %v657_v20, %v653_v9 }
 0x11b   :  { %v421_v38 = vmul.f32 %v420_v31, %v392_v5  ;;  %v445_v39 = vmul.f32 %v444_v33, %v392_v5  ;;  %v639_v40 = vmul.f32 %v638_v34, %v392_v5  ;;  %v663_v41 = vmul.f32 %v662_v35, %v392_v5 }
 0x11c   :  { %v448_v42 = vadd.f32 %v446_v22, %v442_v11  ;;  %v666_v43 = vadd.f32 %v664_v24, %v660_v13  ;;  %v424_v44 = vadd.f32 %v422_v21, %v418_v10  ;;  %v642_v45 = vadd.f32 %v640_v23, %v636_v12 }
 0x11d   :  { %v447_v27 = vadd.f32 %v445_v39, %v441_v26  ;;  %v665_v28 = vadd.f32 %v663_v41, %v659_v37  ;;  %v423_v29 = vadd.f32 %v421_v38, %v417_v25  ;;  %v641_v30 = vadd.f32 %v639_v40, %v635_v32 }
 0x11e   :  { %v82_v31 = vsel %vm80_vm9, 1.0, %v1062_v14  ;;  %v72_v33 = vadd.s32 4294967294, %v70_v19  ;;  %v818_v19 = vstv %s870_s23 }
 0x11f   :  { %v977_v46 = vpack.c.bf16 %v448_v42, %v447_v27  ;;  %v985_v47 = vpack.c.bf16 %v666_v43, %v665_v28  ;;  %v981_v48 = vpack.c.bf16 %v424_v44, %v423_v29  ;;  %v989_v49 = vpack.c.bf16 %v642_v45, %v641_v30 }
 0x120   :  { %vm74_vm10 = vcmp.eq.s32.totalorder %v1103_v3, %v72_v33 }
 0x121   :  { %978 = vmatprep.subr.bf16.mxu0 %v977_v46  ;;  %986 = vmatprep.subr.bf16.mxu1 %v985_v47  ;;  %v76_v34 = vsel %vm74_vm10, 1.0, %v1062_v14 }
 0x122   :  { %980 = vmatpush3.bf16.msra.mxu0 %v977_v46  ;;  %988 = vmatpush3.bf16.msra.mxu1 %v985_v47 }
 0x123   :  { %982 = vmatprep.subr.bf16.mxu0 %v981_v48  ;;  %990 = vmatprep.subr.bf16.mxu1 %v989_v49 }
 0x125   :  { %938 = vmatmul.mubr.msk.f32.vlgmr.msra.gmra.mrb[4].mxu0 %vm85_vm0, %v82_v31  ;;  %952 = vmatmul.mubr.msk.f32.vlgmr.msra.gmra.mrb[4].mxu1 %vm85_vm0, %v82_v31 }
 0x126   :  { %984 = vmatpush3.bf16.msra.mxu0 %v981_v48  ;;  %992 = vmatpush3.bf16.msra.mxu1 %v989_v49 }
 0x127   :  { %944 = vmatprep.mubr.msk.f32.mxu0 %vm85_vm0, %v1122_v17  ;;  %958 = vmatprep.mubr.msk.f32.mxu1 %vm85_vm0, %v1122_v17 }
 0x12d   :  { %945 = vmatmul.mubr.msk.f32.vlgmr.msra.gmra.mrb[4].mxu0 %vm85_vm0, %v76_v34  ;;  %959 = vmatmul.mubr.msk.f32.vlgmr.msra.gmra.mrb[4].mxu1 %vm85_vm0, %v76_v34 }
 0x200   :  { %v946_v35 = vpop.f32.mrb[4].mxu0  ;;  %v960_v36 = vpop.f32.mrb[4].mxu1 }
 0x201   :  { %v614_v50 = vadd.f32 %v946_v35, %v612_v4  ;;  %v820_v51 = vadd.f32 %v960_v36, %v818_v19  ;;  %v602_v52 = vpop.f32.mrb[5].mxu0  ;;  %v808_v17 = vpop.f32.mrb[5].mxu1 }
 0x202   :  { %v613_v53 = vadd.f32 %v612_v4, %v602_v52  ;;  %v819_v3 = vadd.f32 %v818_v19, %v808_v17 }
 0x203   :  { %618 = vst.msk [vmem:[%s1207_s3 + $0x8] sm:$0x3] %vm617_vm11, %v614_v50  ;;  %872 = vst.msk [vmem:[%s1207_s3 + $0x18] sm:$0x3] %vm617_vm11, %v820_v51 }
 0x204   :  { %616 = vst.msk [vmem:[%s1207_s3] sm:$0xff] %vm615_vm12, %v613_v53  ;;  %871 = vst.msk [vmem:[%s1207_s3 + $0x10] sm:$0xff] %vm615_vm12, %v819_v3 }
 0x205   :  { %828 = vsyncpa [#allocation3], 1 }
 0x206   :  { %829 = vsyncpa [#allocation4], 1 }
 0x207   :  { %830 = vsyncpa [#allocation7], 1 }

</bundles_post_ra>
